<compile_context>
chip_gen: v7x
topology: tpu7x:2x2x1
jax: 0.10.0
libtpu: 0.0.40
codegen_flags: <defaults>
</compile_context>

<pallas_src>
import functools

import jax
import jax.numpy as jnp
from jax.experimental import pallas as pl
from jax.experimental.pallas import tpu as pltpu


def _round_up(x, m):
    return (x + m - 1) // m * m


def _transition_kernel(x_ref, w1_ref, b1_ref, w2_ref, b2_ref, out_ref, *, d):
    # fc: Linear -> Tanh -> Linear   (MXU matmuls, EUP tanh, VPU adds)
    x = x_ref[...]
    h = jnp.tanh(
        jnp.dot(x, w1_ref[...], preferred_element_type=jnp.float32) + b1_ref[...]
    )
    tr = jnp.dot(h, w2_ref[...], preferred_element_type=jnp.float32) + b2_ref[...]
    # Residual on the abstract-state slice (static slice within the first lane tile).
    out_ref[...] = x[:, :d] + tr


def transition_predictor(x, w1, b1, w2, b2, *, abstract_state_dim, tile_b=2048):
    """Pallas path.  x: [B, D + A]; w1: [D+A, H]; b1: [1, H]; w2: [H, D]; b2: [1, D].

    Returns [B, D] float32, matching `x[:, :D] + fc(x.float())`.
    """
    x = x.astype(jnp.float32)
    B, in_dim = x.shape
    D = abstract_state_dim
    H = w1.shape[1]

    w1 = w1.astype(jnp.float32)
    b1 = b1.astype(jnp.float32).reshape(1, H)
    w2 = w2.astype(jnp.float32)
    b2 = b2.astype(jnp.float32).reshape(1, D)

    # Batch tile: multiple of 8 rows, capped at `tile_b`, shrunk until row-padding
    # waste is a small fraction of B (bandwidth-bound kernel -> no ~2x row waste).
    TILE_B = min(tile_b, _round_up(B, 8))
    while TILE_B > 8 and (_round_up(B, TILE_B) - B) > max(B // 8, 8):
        TILE_B = max(8, _round_up(TILE_B // 2, 8))
    B_pad = _round_up(B, TILE_B)

    # Only materialize a row-padded copy when strictly needed (small, bounded).
    x_in = x if B_pad == B else jnp.zeros((B_pad, in_dim), jnp.float32).at[:B].set(x)

    out = pl.pallas_call(
        functools.partial(_transition_kernel, d=D),
        out_shape=jax.ShapeDtypeStruct((B_pad, D), jnp.float32),
        grid_spec=pltpu.PrefetchScalarGridSpec(
            num_scalar_prefetch=0,
            grid=(B_pad // TILE_B,),
            in_specs=[
                # x: tiled over the batch grid axis (auto-pipelined); last dim is
                # the full array dim (36), so no column padding is required.
                pl.BlockSpec((TILE_B, in_dim), lambda i: (i, 0)),
                # Weights / biases: constant block index -> VMEM-resident.
                pl.BlockSpec((in_dim, H), lambda i: (0, 0)),
                pl.BlockSpec((1, H), lambda i: (0, 0)),
                pl.BlockSpec((H, D), lambda i: (0, 0)),
                pl.BlockSpec((1, D), lambda i: (0, 0)),
            ],
            out_specs=pl.BlockSpec((TILE_B, D), lambda i: (i, 0)),
        ),
        compiler_params=pltpu.CompilerParams(
            dimension_semantics=("parallel",)),
    )(x_in, w1, b1, w2, b2)

    return out if B_pad == B else out[:B]


def transition_predictor_ref(x, w1, b1, w2, b2, *, abstract_state_dim):
    """Pure-JAX reference of the PyTorch forward."""
    xf = x.astype(jnp.float32)
    h = jnp.tanh(xf @ w1 + b1)
    tr = h @ w2 + b2
    return xf[:, :abstract_state_dim] + tr


def transition_predictor_auto(x, w1, b1, w2, b2, *, abstract_state_dim,
                              tile_b=2048, min_pallas_batch=512):
    """Dispatch: plain XLA for tiny CRAR batches (pallas_call fixed cost dominates),
    Pallas kernel for large-batch rollouts."""
    if x.shape[0] < min_pallas_batch:
        return transition_predictor_ref(
            x, w1, b1, w2, b2, abstract_state_dim=abstract_state_dim)
    return transition_predictor(
        x, w1, b1, w2, b2, abstract_state_dim=abstract_state_dim, tile_b=tile_b)


if __name__ == "__main__":
    # Small shapes consistent with the module: x = concat([abstract_state, one_hot_action])
    batch = 8
    abstract_state_dim = 32
    num_actions = 4
    hidden = 32
    in_dim = abstract_state_dim + num_actions

    key = jax.random.PRNGKey(0)
    kx, kw1, kb1, kw2, kb2 = jax.random.split(key, 5)

    # Deterministic synthetic parameters (fc = Linear(in_dim, hidden) -> Tanh -> Linear(hidden, D))
    x = jax.random.normal(kx, (batch, in_dim), dtype=jnp.float32)
    w1 = jax.random.normal(kw1, (in_dim, hidden), dtype=jnp.float32) * 0.1
    b1 = jax.random.normal(kb1, (1, hidden), dtype=jnp.float32) * 0.1
    w2 = jax.random.normal(kw2, (hidden, abstract_state_dim), dtype=jnp.float32) * 0.1
    b2 = jax.random.normal(kb2, (1, abstract_state_dim), dtype=jnp.float32) * 0.1

    out = transition_predictor(x, w1, b1, w2, b2,
                               abstract_state_dim=abstract_state_dim)
    jax.block_until_ready(out)

    ref = transition_predictor_ref(x, w1, b1, w2, b2,
                                   abstract_state_dim=abstract_state_dim)
    assert out.shape == (batch, abstract_state_dim)
    assert jnp.allclose(out, ref, atol=1e-5, rtol=1e-5), "mismatch vs reference"

    # Larger-batch check: exercises >= 2 grid steps (megacore sharding on v7x)
    # with zero wrapper-side copies (B divides TILE_B exactly).
    big_B = 4096
    xb = jax.random.normal(jax.random.PRNGKey(1), (big_B, in_dim), dtype=jnp.float32)
    out_big = transition_predictor(xb, w1, b1, w2, b2,
                                   abstract_state_dim=abstract_state_dim,
                                   tile_b=2048)
    jax.block_until_ready(out_big)
    ref_big = transition_predictor_ref(xb, w1, b1, w2, b2,
                                       abstract_state_dim=abstract_state_dim)
    assert out_big.shape == (big_B, abstract_state_dim)
    assert jnp.allclose(out_big, ref_big, atol=1e-5, rtol=1e-5), "big-batch mismatch"

    # Non-multiple batch: exercises the bounded row-padding path.
    odd_B = 1000
    xo = jax.random.normal(jax.random.PRNGKey(2), (odd_B, in_dim), dtype=jnp.float32)
    out_odd = transition_predictor(xo, w1, b1, w2, b2,
                                   abstract_state_dim=abstract_state_dim,
                                   tile_b=256)
    jax.block_until_ready(out_odd)
    ref_odd = transition_predictor_ref(xo, w1, b1, w2, b2,
                                       abstract_state_dim=abstract_state_dim)
    assert out_odd.shape == (odd_B, abstract_state_dim)
    assert jnp.allclose(out_odd, ref_odd, atol=1e-5, rtol=1e-5), "odd-batch mismatch"

    print("KERNEL_OK")
</pallas_src>

<mosaic_0001>
module attributes {stable_mosaic.version = 11 : i64} {
  func.func @_transition_kernel(%arg0: i32, %arg1: memref<8x36xf32, #tpu.memory_space<vmem>>, %arg2: memref<36x32xf32, #tpu.memory_space<vmem>>, %arg3: memref<1x32xf32, #tpu.memory_space<vmem>>, %arg4: memref<32x32xf32, #tpu.memory_space<vmem>>, %arg5: memref<1x32xf32, #tpu.memory_space<vmem>>, %arg6: memref<8x32xf32, #tpu.memory_space<vmem>>) attributes {dimension_semantics = [#tpu.dimension_semantics<parallel>], iteration_bounds = array<i64: 1>, scalar_prefetch = 0 : i64, scratch_operands = 0 : i64, tpu.core_type = #tpu.core_type<tc>, window_params = [{transform_indices = @transform_0, window_bounds = array<i64: 8, 36>}, {pipeline_mode = #tpu.pipeline_mode<synchronous>, transform_indices = @transform_1, window_bounds = array<i64: 36, 32>}, {pipeline_mode = #tpu.pipeline_mode<synchronous>, transform_indices = @transform_2, window_bounds = array<i64: 1, 32>}, {pipeline_mode = #tpu.pipeline_mode<synchronous>, transform_indices = @transform_3, window_bounds = array<i64: 32, 32>}, {pipeline_mode = #tpu.pipeline_mode<synchronous>, transform_indices = @transform_4, window_bounds = array<i64: 1, 32>}, {transform_indices = @transform_5, window_bounds = array<i64: 8, 32>}]} {
    %c0 = arith.constant 0 : index
    %c0_0 = arith.constant 0 : index
    %0 = vector.load %arg1[%c0, %c0_0] : memref<8x36xf32, #tpu.memory_space<vmem>>, vector<8x36xf32>
    %c0_1 = arith.constant 0 : index
    %c0_2 = arith.constant 0 : index
    %1 = vector.load %arg2[%c0_1, %c0_2] : memref<36x32xf32, #tpu.memory_space<vmem>>, vector<36x32xf32>
    %cst = arith.constant dense<0.000000e+00> : vector<8x32xf32>
    %2 = tpu.matmul %0, %1, %cst {dimension_numbers = #tpu.dot_dimension_numbers<[1], [0], [0], [1], [0, 0, 1, 1], [], []>} : vector<8x36xf32>, vector<36x32xf32>, vector<8x32xf32> -> vector<8x32xf32>
    %c0_3 = arith.constant 0 : index
    %c0_4 = arith.constant 0 : index
    %3 = vector.load %arg3[%c0_3, %c0_4] : memref<1x32xf32, #tpu.memory_space<vmem>>, vector<1x32xf32>
    %4 = vector.broadcast %3 : vector<1x32xf32> to vector<8x32xf32>
    %5 = arith.addf %2, %4 : vector<8x32xf32>
    %6 = math.tanh %5 : vector<8x32xf32>
    %c0_5 = arith.constant 0 : index
    %c0_6 = arith.constant 0 : index
    %7 = vector.load %arg4[%c0_5, %c0_6] : memref<32x32xf32, #tpu.memory_space<vmem>>, vector<32x32xf32>
    %cst_7 = arith.constant dense<0.000000e+00> : vector<8x32xf32>
    %8 = tpu.matmul %6, %7, %cst_7 {dimension_numbers = #tpu.dot_dimension_numbers<[1], [0], [0], [1], [0, 0, 1, 1], [], []>} : vector<8x32xf32>, vector<32x32xf32>, vector<8x32xf32> -> vector<8x32xf32>
    %c0_8 = arith.constant 0 : index
    %c0_9 = arith.constant 0 : index
    %9 = vector.load %arg5[%c0_8, %c0_9] : memref<1x32xf32, #tpu.memory_space<vmem>>, vector<1x32xf32>
    %10 = vector.broadcast %9 : vector<1x32xf32> to vector<8x32xf32>
    %11 = arith.addf %8, %10 : vector<8x32xf32>
    %12 = vector.extract_strided_slice %0 {offsets = [0, 0], sizes = [8, 32], strides = [1, 1]} : vector<8x36xf32> to vector<8x32xf32>
    %13 = arith.addf %12, %11 : vector<8x32xf32>
    %c0_10 = arith.constant 0 : index
    %c0_11 = arith.constant 0 : index
    %14 = vector.load %arg6[%c0_10, %c0_11] : memref<8x32xf32, #tpu.memory_space<vmem>>, vector<8x32xf32>
    tpu.vector_store %arg6[%c0_10, %c0_11], %13 {strides = array<i32>} : memref<8x32xf32, #tpu.memory_space<vmem>>, vector<8x32xf32>,
    return
  }
  func.func @transform_0(%arg0: i32) -> (i32, i32) {
    %c0_i32 = arith.constant 0 : i32
    %c0_i32_0 = arith.constant 0 : i32
    return %arg0, %c0_i32 : i32, i32
  }
  func.func @transform_1(%arg0: i32) -> (i32, i32) {
    %c0_i32 = arith.constant 0 : i32
    %c0_i32_0 = arith.constant 0 : i32
    %c0_i32_1 = arith.constant 0 : i32
    return %c0_i32, %c0_i32_0 : i32, i32
  }
  func.func @transform_2(%arg0: i32) -> (i32, i32) {
    %c0_i32 = arith.constant 0 : i32
    %c0_i32_0 = arith.constant 0 : i32
    %c0_i32_1 = arith.constant 0 : i32
    return %c0_i32, %c0_i32_0 : i32, i32
  }
  func.func @transform_3(%arg0: i32) -> (i32, i32) {
    %c0_i32 = arith.constant 0 : i32
    %c0_i32_0 = arith.constant 0 : i32
    %c0_i32_1 = arith.constant 0 : i32
    return %c0_i32, %c0_i32_0 : i32, i32
  }
  func.func @transform_4(%arg0: i32) -> (i32, i32) {
    %c0_i32 = arith.constant 0 : i32
    %c0_i32_0 = arith.constant 0 : i32
    %c0_i32_1 = arith.constant 0 : i32
    return %c0_i32, %c0_i32_0 : i32, i32
  }
  func.func @transform_5(%arg0: i32) -> (i32, i32) {
    %c0_i32 = arith.constant 0 : i32
    %c0_i32_0 = arith.constant 0 : i32
    return %arg0, %c0_i32 : i32, i32
  }
}

</mosaic_0001>

<bundles_post_ra>
// kernel: tpu_custom_call.1
= control target key start
LH: loop header
LB: loop body
LE: loop exit
PB: predicated region body
PF: predicated region fallthrough
CT: control target
= control target key end

     0   :  { %v296_v3 = vmov 0.0|0.0   ;;  %vm297_vm0 = vmmov 0   ;;  %v298_v6 = vmov 0.0   ;;  %s378_s0 = inlined_call_operand.vmem [shape: f32[8,36], index: 0, kind: input, shape index: {}]   ;;  %s379_s1 = inlined_call_operand.vmem [shape: f32[36,32], index: 1, kind: input, shape index: {}]   ;;  %s380_s2 = inlined_call_operand.vmem [shape: f32[1,32], index: 2, kind: input, shape index: {}]   ;;  %s381_s3 = inlined_call_operand.vmem [shape: f32[32,32], index: 3, kind: input, shape index: {}]   ;;  %s382_s4 = inlined_call_operand.vmem [shape: f32[1,32], index: 4, kind: input, shape index: {}]   ;;  %s383_s5 = inlined_call_operand.hbm [shape: f32[8,32], index: 5, kind: output, shape index: {}]  }
   0x1   :  { %v22_v0 = vld [vmem:[%s379_s1] sm:$0xff]  ;;  %v23_v1 = vld [vmem:[%s379_s1 + $0x8] sm:$0xff]  ;;  %v24_v2 = vld [vmem:[%s379_s1 + $0x10] sm:$0xff]  ;;  %254 = vmatprep.subr.bf16.mxu0 %v296_v3  ;;  %260 = vmatprep.subr.bf16.mxu1 %v296_v3 }
   0x2   :  { %v255_v4 = vpack.c.bf16 %v23_v1, %v22_v0  ;;  %v25_v5 = vld [vmem:[%s379_s1 + $0x18] sm:$0xff]  ;;  %240 = vmatprep.mubr.msk.f32.mxu0 %vm297_vm0, %v298_v6  ;;  %251 = vmatprep.mubr.msk.f32.mxu1 %vm297_vm0, %v298_v6 }
   0x3   :  { %10 = vsyncpa [#allocation3], 0  ;;  %v258_v7 = vpack.c.bf16 %v25_v5, %v24_v2  ;;  %v26_v8 = vld [vmem:[%s379_s1 + $0x20] sm:$0xf]  ;;  %vm38_vm1 = vcmask 1043456   ;;  %vm34_vm2 = vcmask 293888  }
   0x4   :  { %256 = vmatpush3.bf16.msra.mxu0 %v255_v4  ;;  %v21_v9 = vld [vmem:[%s378_s0] sm:$0xff]  ;;  %v114_v11 = vld [vmem:[%s381_s3 + $0x8] sm:$0xff]  ;;  %v115_v12 = vld [vmem:[%s381_s3 + $0x10] sm:$0xff]  ;;  %vm124_vm3 = vcmask 261120  }
   0x5   :  { %257 = vmatprep.subr.bf16.mxu0 %v296_v3  ;;  %v113_v10 = vld [vmem:[%s381_s3] sm:$0xff]  ;;  %v116_v14 = vld [vmem:[%s381_s3 + $0x18] sm:$0xff]  ;;  %s299_s3 = smov [#allocation2]  }
   0x6   :  { %v261_v13 = vpack.c.bf16 %v114_v11, %v113_v10  ;;  %v264_v15 = vpack.c.bf16 %v116_v14, %v115_v12  ;;  %v214_v16 = vld [vmem:[%s380_s2] ss:$0 sm:$0xff]  ;;  %s206_s15 = sshll.u32 %s299_s3, 4  ;;  %s207_s15 = int_to_ptr.vmem [resolvable:$true] %s206_s15 }
   0x7   :  { %v217_v21 = vld [vmem:[%s382_s4] ss:$0 sm:$0xff]  ;;  %s272_s2 = scalar_lea.vmem %s207_s15, 128  ;;  %p277_p1 = scmp.lt.s32.totalorder %s207_s15, %s207_s15 }
   0x8   :  { %259 = vmatpush3.bf16.msra.mxu0 %v258_v7  ;;  %262 = vmatpush3.bf16.msra.mxu1 %v261_v13  ;;  %p273_p0 = scmp.ne.s32.totalorder %s207_s15, %s272_s2  ;;  %p278_p2 = scmp.lt.s32.totalorder %s272_s2, %s272_s2 }
   0x9   :  { %238 = vmatprep.subr.mxu0 %v298_v6  ;;  %263 = vmatprep.subr.bf16.mxu1 %v296_v3 }
   0xa   :  { %p279_p3 = por %p278_p2, %p277_p1 }
   0xc   :  { %239 = vmatpush3.msk.msra.mxu0 %vm38_vm1, %v26_v8  ;;  %265 = vmatpush3.bf16.msra.mxu1 %v264_v15  ;;  %p280_p4 = pnand %p279_p3, %p273_p0 }
   0xd   :  { %241 = vmatmul.mubr.msk.f32.vlgmr.msra.gmra.mrb[0].mxu0 %vm34_vm2, %v21_v9 }
  0xe0   :  { %v108_v17 = vpop.f32.mrb[0].mxu0 }
  0xe1   :  { %v109_v18 = vadd.f32 %v214_v16, %v108_v17  ;;  %v242_v19 = vpop.f32.mrb[1].mxu0 }
  0xe3   :  { %270 = vtanh.f32 %v109_v18 }
  0xed   :  { %v271_v20 = vpop.eup %270 }
  0xee   :  { %252 = vmatmul.mubr.msk.f32.vlgmr.msra.gmra.mrb[0].mxu1 %vm124_vm3, %v271_v20 }
 0x1c1   :  { %v194_v22 = vpop.f32.mrb[0].mxu1 }
 0x1c2   :  { %v195_v23 = vadd.f32 %v217_v21, %v194_v22  ;;  %v253_v24 = vpop.f32.mrb[1].mxu1 }
 0x1c4   :  { %v198_v25 = vadd.f32 %v195_v23, %v21_v9 }
 0x1c6   :  { %199 = vst.msk [vmem:[#allocation2] sm:$0xff] %vm124_vm3, %v198_v25 }
 0x1c7   :  { %283 = shalt.err (!%p280_p4)
}
 0x1c8   :  { %s284_s18 = scalar_lea.hbm %s383_s5, 128 }
 0x1c9   :  { %p285_p5 = scmp.ne.s32.totalorder %s383_s5, %s284_s18  ;;  %p288_p6 = scmp.lt.u32.totalorder %s284_s18, %s383_s5 }
 0x1cb   :  { %p290_p7 = pnand %p288_p6, %p285_p5 }
 0x1cd   :  { %293 = shalt.err (!%p290_p7)
}
 0x1ce   :  { %209 = dma.vmem_to_hbm [thread:$0]  %s207_s15, 128, %s383_s5, [#allocation3]  }
 0x1cf   :  { %294 = dma.done.wait [#allocation3], 128  }
 0x1d0   :  { %295 = vsyncadd [#allocation3], 4294967168 }
 0x1d1   :  { %213 = vsyncpa [#allocation3], 1 }

</bundles_post_ra>
